<compile_context>
chip_gen: v5e
topology: v5e:2x2
jax: 0.10.0
libtpu: 0.0.40
codegen_flags: <defaults>
</compile_context>

<pallas_src>
import jax
import jax.numpy as jnp
from jax import lax
from jax.experimental import pallas as pl
from jax.experimental.pallas import tpu as pltpu


def attention_kernel(rnn_ref, fh_ref, w_fh_ref, w2a_ref, slab_ref):
    # rnn  : [B, S, H]             fh   : [B, H]
    # w_fh : [H, OUT + H]  = [ W2b^T lane-padded to OUT | W1 ]   (RHS for fh)
    # w2a  : [H, OUT]      =   W2a^T lane-padded to OUT          (RHS for ctx)
    rnn = rnn_ref[...]
    fh = fh_ref[...]
    w_fh = w_fh_ref[...]
    w2a = w2a_ref[...]

    B, S, H = rnn.shape
    R, OUT = slab_ref.shape

    # One fused matmul for everything that has fh as LHS:
    #   lanes [0:OUT]     -> fh @ W2b^T  (hidden half of fc2, lane-padded)
    #   lanes [OUT:OUT+H] -> fh @ W1     (scores projection; W1 folded onto h)
    fh_all = lax.dot_general(fh, w_fh, (((1,), (0,)), ((), ())),
                             preferred_element_type=jnp.float32)   # [B, OUT+H]
    fh_proj = fh_all[:, :OUT]                                      # [B, OUT]
    u = fh_all[:, OUT:]                                            # [B, H]

    # scores[b,s] = sum_h rnn[b,s,h] * u[b,h]       (VPU mul + lane reduce)
    scores = jnp.sum(rnn * u[:, None, :], axis=2)                  # [B, S]

    # exact softmax over the sequence axis (dim=1 in the PyTorch forward)
    m = jnp.max(scores, axis=1, keepdims=True)
    e = jnp.exp(scores - m)
    attn = e / jnp.sum(e, axis=1, keepdims=True)                   # [B, S]

    # context[b,h] = sum_s rnn[b,s,h] * attn[b,s]   (VPU mul + sublane reduce)
    context = jnp.sum(rnn * attn[:, :, None], axis=1)              # [B, H]

    # fc2 (bias=False) + tanh, concat folded away:
    #   tanh(cat(ctx, fh) @ W2^T) == tanh(ctx @ W2a^T + fh @ W2b^T)
    # Both RHS blocks are zero in lanes [H:OUT], so av comes out of tanh()
    # already lane-padded with exact zeros (tanh(0) == 0).
    av = jnp.tanh(
        lax.dot_general(context, w2a, (((1,), (0,)), ((), ())),
                        preferred_element_type=jnp.float32)
        + fh_proj)                                                 # [B, OUT]

    # Lane-dense slab built entirely in-register, then ONE unmasked full store.
    if OUT > S:
        attn_p = jnp.concatenate(
            [attn, jnp.zeros((B, OUT - S), jnp.float32)], axis=1)  # [B, OUT]
    else:
        attn_p = attn
    parts = [av, attn_p]
    if R > 2 * B:
        parts.append(jnp.zeros((R - 2 * B, OUT), jnp.float32))
    slab_ref[...] = jnp.concatenate(parts, axis=0).astype(slab_ref.dtype)


def prepare_attention_weights(w1, w2, seq_len):
    """One-time weight layout prep. Keep OUTSIDE the per-step jitted forward.

    w1 = fc1.weight ([H, H], torch [out, in] layout)
    w2 = fc2.weight ([H, 2H], torch [out, in] layout)
    Returns:
      w_fh : [H, out_lanes + H]  fused RHS for the fh matmul
             (lane-padded W2b^T | W1)
      w2a  : [H, out_lanes]      lane-padded W2a^T (context half of fc2)
    """
    H = w1.shape[0]
    out_lanes = int(pl.cdiv(max(H, seq_len), 128) * 128)
    w2a_t = jnp.transpose(w2[:, :H])        # [H, H]  context half, [in, out]
    w2b_t = jnp.transpose(w2[:, H:])        # [H, H]  hidden half,  [in, out]
    if out_lanes > H:
        pad = jnp.zeros((H, out_lanes - H), w1.dtype)
        w2a_p = jnp.concatenate([w2a_t, pad], axis=1)   # [H, out_lanes]
        w2b_p = jnp.concatenate([w2b_t, pad], axis=1)   # [H, out_lanes]
    else:
        w2a_p, w2b_p = w2a_t, w2b_t
    w_fh = jnp.concatenate([w2b_p, w1], axis=1)         # [H, out_lanes + H]
    return w_fh, w2a_p


def attention_forward(rnn_outputs, final_hidden_state, w_fh, w2a_p):
    """Pallas forward of the Attention block (prepared weights).

    Returns (attention_vector [B, H], attention_weights [B, S]).
    """
    B, S, H = rnn_outputs.shape
    out_lanes = w2a_p.shape[1]
    R = max(8, 2 * B)                      # dense (8,128) sublane tile

    vmem = pl.BlockSpec(memory_space=pltpu.MemorySpace.VMEM)
    slab = pl.pallas_call(
        attention_kernel,
        out_shape=jax.ShapeDtypeStruct((R, out_lanes), jnp.float32),
        in_specs=[vmem, vmem, vmem, vmem],
        out_specs=vmem,
        # TODO(synk): at production B/S/H switch to a batch(/S) grid with
        # double-buffered BlockSpecs, dimension_semantics=("parallel", ...)
        # and generation-specific tile sizing (v7x: 64 MiB VMEM, 2 TCs).
    )(rnn_outputs, final_hidden_state, w_fh, w2a_p)

    attention_vector = slab[0:B, :H]
    attention_weights = slab[B:2 * B, :S]
    return attention_vector, attention_weights


def attention_reference(rnn_outputs, final_hidden_state, w1, w2):
    # Pure-JAX reference mirroring the PyTorch forward exactly (un-folded W1,
    # explicit concat), so it also validates the algebraic rewrites.
    hp = jax.lax.Precision.HIGHEST
    proj = jnp.einsum('bsh,oh->bso', rnn_outputs, w1, precision=hp)
    scores = jnp.einsum('bso,bo->bs', proj, final_hidden_state, precision=hp)
    attn = jax.nn.softmax(scores, axis=1)
    context = jnp.einsum('bsh,bs->bh', rnn_outputs, attn, precision=hp)
    pre = jnp.concatenate([context, final_hidden_state], axis=1)
    av = jnp.tanh(jnp.einsum('bi,oi->bo', pre, w2, precision=hp))
    return av, attn


if __name__ == "__main__":
    B, S, H = 2, 8, 32

    key = jax.random.PRNGKey(0)
    k_rnn, k_fh, k_w1, k_w2 = jax.random.split(key, 4)

    rnn_outputs = jax.random.normal(k_rnn, (B, S, H), dtype=jnp.float32)
    final_hidden = jax.random.normal(k_fh, (B, H), dtype=jnp.float32)

    # Deterministic synthetic weights (nn.Linear layout: (out, in), bias=False),
    # uniform in [-1/sqrt(in), 1/sqrt(in)] like torch's default init.
    bound1 = 1.0 / jnp.sqrt(jnp.float32(H))
    bound2 = 1.0 / jnp.sqrt(jnp.float32(2 * H))
    w1 = jax.random.uniform(k_w1, (H, H), jnp.float32, -bound1, bound1)
    w2 = jax.random.uniform(k_w2, (H, 2 * H), jnp.float32, -bound2, bound2)

    # One-time weight prep, hoisted out of the jitted per-step forward.
    w_fh, w2a_p = prepare_attention_weights(w1, w2, S)
    w_fh, w2a_p = jax.block_until_ready((w_fh, w2a_p))

    fwd = jax.jit(attention_forward)
    av, aw = fwd(rnn_outputs, final_hidden, w_fh, w2a_p)
    av, aw = jax.block_until_ready((av, aw))

    av_ref, aw_ref = attention_reference(rnn_outputs, final_hidden, w1, w2)
    assert av.shape == (B, H) and aw.shape == (B, S)
    # The approximate-reciprocal softmax was removed (exact divide); remaining
    # tolerance only budgets for the MXU's default-precision f32 matmul passes
    # inside the kernel vs the HIGHEST-precision XLA reference.
    assert jnp.allclose(av, av_ref, atol=2e-3, rtol=2e-3)
    assert jnp.allclose(aw, aw_ref, atol=2e-3, rtol=2e-3)
    # attention weights sum to 1 over the sequence axis (exact softmax divide)
    assert jnp.allclose(jnp.sum(aw, axis=1), jnp.ones((B,)), atol=1e-5)

    print("KERNEL_OK")
</pallas_src>

<mosaic_0001>
module attributes {stable_mosaic.version = 11 : i64} {
  func.func @attention_kernel(%arg0: memref<2x8x32xf32, #tpu.memory_space<vmem>>, %arg1: memref<2x32xf32, #tpu.memory_space<vmem>>, %arg2: memref<32x160xf32, #tpu.memory_space<vmem>>, %arg3: memref<32x128xf32, #tpu.memory_space<vmem>>, %arg4: memref<8x128xf32, #tpu.memory_space<vmem>>) attributes {dimension_semantics = [], scalar_prefetch = 0 : i64, scratch_operands = 0 : i64, tpu.core_type = #tpu.core_type<tc>} {
    %c0 = arith.constant 0 : index
    %c0_0 = arith.constant 0 : index
    %c0_1 = arith.constant 0 : index
    %0 = vector.load %arg0[%c0, %c0_0, %c0_1] : memref<2x8x32xf32, #tpu.memory_space<vmem>>, vector<2x8x32xf32>
    %c0_2 = arith.constant 0 : index
    %c0_3 = arith.constant 0 : index
    %1 = vector.load %arg1[%c0_2, %c0_3] : memref<2x32xf32, #tpu.memory_space<vmem>>, vector<2x32xf32>
    %c0_4 = arith.constant 0 : index
    %c0_5 = arith.constant 0 : index
    %2 = vector.load %arg2[%c0_4, %c0_5] : memref<32x160xf32, #tpu.memory_space<vmem>>, vector<32x160xf32>
    %c0_6 = arith.constant 0 : index
    %c0_7 = arith.constant 0 : index
    %3 = vector.load %arg3[%c0_6, %c0_7] : memref<32x128xf32, #tpu.memory_space<vmem>>, vector<32x128xf32>
    %cst = arith.constant dense<0.000000e+00> : vector<2x160xf32>
    %4 = tpu.matmul %1, %2, %cst {dimension_numbers = #tpu.dot_dimension_numbers<[1], [0], [0], [1], [0, 0, 1, 1], [], []>} : vector<2x32xf32>, vector<32x160xf32>, vector<2x160xf32> -> vector<2x160xf32>
    %5 = vector.extract_strided_slice %4 {offsets = [0, 0], sizes = [2, 128], strides = [1, 1]} : vector<2x160xf32> to vector<2x128xf32>
    %6 = vector.extract_strided_slice %4 {offsets = [0, 128], sizes = [2, 32], strides = [1, 1]} : vector<2x160xf32> to vector<2x32xf32>
    %7 = vector.shape_cast %6 : vector<2x32xf32> to vector<2x1x32xf32>
    %8 = vector.broadcast %7 : vector<2x1x32xf32> to vector<2x8x32xf32>
    %9 = arith.mulf %0, %8 : vector<2x8x32xf32>
    %cst_8 = arith.constant dense<0.000000e+00> : vector<2x8xf32>
    %10 = vector.multi_reduction <add>, %9, %cst_8 [2] : vector<2x8x32xf32> to vector<2x8xf32>
    %cst_9 = arith.constant dense<0xFF800000> : vector<2xf32>
    %11 = vector.multi_reduction <maximumf>, %10, %cst_9 [1] : vector<2x8xf32> to vector<2xf32>
    %12 = vector.shape_cast %11 : vector<2xf32> to vector<2x1xf32>
    %13 = vector.broadcast %12 : vector<2x1xf32> to vector<2x8xf32>
    %14 = arith.subf %10, %13 : vector<2x8xf32>
    %15 = math.exp %14 : vector<2x8xf32>
    %cst_10 = arith.constant dense<0.000000e+00> : vector<2xf32>
    %16 = vector.multi_reduction <add>, %15, %cst_10 [1] : vector<2x8xf32> to vector<2xf32>
    %17 = vector.shape_cast %16 : vector<2xf32> to vector<2x1xf32>
    %18 = vector.broadcast %17 : vector<2x1xf32> to vector<2x8xf32>
    %19 = arith.divf %15, %18 : vector<2x8xf32>
    %20 = vector.shape_cast %19 : vector<2x8xf32> to vector<2x8x1xf32>
    %21 = vector.broadcast %20 : vector<2x8x1xf32> to vector<2x8x32xf32>
    %22 = arith.mulf %0, %21 : vector<2x8x32xf32>
    %cst_11 = arith.constant dense<0.000000e+00> : vector<2x32xf32>
    %23 = vector.multi_reduction <add>, %22, %cst_11 [1] : vector<2x8x32xf32> to vector<2x32xf32>
    %cst_12 = arith.constant dense<0.000000e+00> : vector<2x128xf32>
    %24 = tpu.matmul %23, %3, %cst_12 {dimension_numbers = #tpu.dot_dimension_numbers<[1], [0], [0], [1], [0, 0, 1, 1], [], []>} : vector<2x32xf32>, vector<32x128xf32>, vector<2x128xf32> -> vector<2x128xf32>
    %25 = arith.addf %24, %5 : vector<2x128xf32>
    %26 = math.tanh %25 : vector<2x128xf32>
    %cst_13 = arith.constant 0.000000e+00 : f32
    %27 = vector.broadcast %cst_13 : f32 to vector<2x120xf32>
    %28 = tpu.concatenate %19, %27 in 1 : vector<2x8xf32>, vector<2x120xf32> -> vector<2x128xf32>
    %cst_14 = arith.constant 0.000000e+00 : f32
    %29 = vector.broadcast %cst_14 : f32 to vector<4x128xf32>
    %30 = tpu.concatenate %26, %28, %29 in 0 : vector<2x128xf32>, vector<2x128xf32>, vector<4x128xf32> -> vector<8x128xf32>
    %c0_15 = arith.constant 0 : index
    %c0_16 = arith.constant 0 : index
    %31 = vector.load %arg4[%c0_15, %c0_16] : memref<8x128xf32, #tpu.memory_space<vmem>>, vector<8x128xf32>
    tpu.vector_store %arg4[%c0_15, %c0_16], %30 {strides = array<i32>} : memref<8x128xf32, #tpu.memory_space<vmem>>, vector<8x128xf32>,
    return
  }
}

</mosaic_0001>

<bundles_post_ra>
// kernel: attention_forward.1
= control target key start
LH: loop header
LB: loop body
LE: loop exit
PB: predicated region body
PF: predicated region fallthrough
CT: control target
= control target key end

     0   :  { %9 = vsyncpa [#allocation3], 0  ;;  %s507_s0 = inlined_call_operand.hbm [shape: f32[2,8,32], index: 0, kind: input, shape index: {}]   ;;  %s508_s1 = inlined_call_operand.hbm [shape: f32[2,32], index: 1, kind: input, shape index: {}]   ;;  %s509_s2 = inlined_call_operand.hbm [shape: f32[32,160], index: 2, kind: input, shape index: {}]   ;;  %s510_s3 = inlined_call_operand.hbm [shape: f32[32,128], index: 3, kind: input, shape index: {}]   ;;  %s511_s4 = inlined_call_operand.vmem [shape: f32[8,128], index: 4, kind: output, shape index: {}]  }
   0x1   :  { %10 = vsyncpa [#allocation5], 0  ;;  %s30_s17 = sshll.u32 %s508_s1, 4  ;;  %s31_s17 = int_to_ptr.hbm [resolvable:$true] %s30_s17 }
   0x2   :  { %11 = vsyncpa [#allocation8], 0  ;;  %s425_s18 = smov [#allocation4]   ;;  %s16_s22 = sshll.u32 %s507_s0, 4  ;;  %s17_s22 = int_to_ptr.hbm [resolvable:$true] %s16_s22 }
   0x3   :  { %s32_s19 = sshll.u32 %s425_s18, 4  ;;  %s426_s23 = smov [#allocation2]   ;;  %s33_s19 = int_to_ptr.vmem [resolvable:$true] %s32_s19 }
   0x4   :  { %35 = dma.hbm_to_vmem [thread:$0]  %s31_s17, 32, %s33_s19, [#allocation5]  }
   0x5   :  { %s18_s24 = sshll.u32 %s426_s23, 4  ;;  %s427_s25 = smov 128   ;;  %s19_s24 = int_to_ptr.vmem [resolvable:$true] %s18_s24 }
   0x6   :  { %s428_s26 = smov 8   ;;  %s40_s1 = sshll.u32 %s509_s2, 4  ;;  %s41_s1 = int_to_ptr.hbm [resolvable:$true] %s40_s1 }
   0x7   :  { %24 = dma.hbm_to_vmem [thread:$0]  %s17_s22, 256, %s19_s24, [#allocation3], %s427_s25, %s427_s25, %s428_s26  }
   0x8   :  { %s429_s29 = smov [#allocation6]   ;;  %s53_s0 = sshll.u32 %s510_s3, 4  ;;  %s54_s0 = int_to_ptr.hbm [resolvable:$true] %s53_s0 }
   0x9   :  { %s42_s30 = sshll.u32 %s429_s29, 4  ;;  %s430_s7 = smov 256   ;;  %s43_s30 = int_to_ptr.vmem [resolvable:$true] %s42_s30 }
   0xa   :  { %s431_s8 = smov 16   ;;  %s432_s9 = smov [#allocation7]  }
   0xb   :  { %48 = dma.hbm_to_vmem [thread:$0]  %s41_s1, 1024, %s43_s30, [#allocation5], %s430_s7, %s430_s7, %s431_s8  }
   0xc   :  { %s55_s10 = sshll.u32 %s432_s9, 4  ;;  %s56_s10 = int_to_ptr.vmem [resolvable:$true] %s55_s10 }
   0xd   :  { %61 = dma.hbm_to_vmem [thread:$0]  %s54_s0, 512, %s56_s10, [#allocation8], %s427_s25, %s427_s25, %s428_s26  }
   0xe   :  { %419 = dma.done.wait [#allocation3], 256  }
   0xf   :  { %420 = vsyncadd [#allocation3], 4294967040 }
  0x10   :  { %421 = dma.done.wait [#allocation5], 1056  }
  0x11   :  { %422 = vsyncadd [#allocation5], 4294966240 }
  0x12   :  { %423 = dma.done.wait [#allocation8], 512  }
  0x13   :  { %424 = vsyncadd [#allocation8], 4294966784  ;;  %v88_v0 = vld [vmem:[#allocation6 + $0x38] sm:$0xff]  ;;  %v86_v1 = vld [vmem:[#allocation6 + $0x28] sm:$0xff]  ;;  %vm93_vm0 = vcmask 261120   ;;  %v153_v16 = vlaneseq  ;;  %vm157_vm1 = vcmask 1041409  }
  0x14   :  { %129 = vmatpush.msra.mxu1 %v88_v0  ;;  %v84_v2 = vld [vmem:[#allocation6 + $0x18] sm:$0xff]  ;;  %v82_v3 = vld [vmem:[#allocation6 + $0x8] sm:$0xff]  ;;  %vm160_vm2 = vcmask 58368   ;;  %v433_v23 = vmov 0   ;;  %vm281_vm11 = vcmask 64512   ;;  %vm286_vm12 = vcmask 1041408  }
  0x15   :  { %v471_v4 = vld [vmem:[#allocation4] sm:$0x3]  ;;  %v475_v6 = vld [vmem:[#allocation2] sm:$0xff]  ;;  %v479_v12 = vld [vmem:[#allocation2 + $0x8] sm:$0xff]  ;;  %v483_v17 = vand.u32 127, %v153_v16  ;;  %311 = vset.pattern.permute.xlu2 %v433_v23  ;;  %310 = vset.pattern.permute.xlu1 %v433_v23  ;;  %vm288_vm13 = vcmask 1043456  }
  0x16   :  { %130 = vmatpush.msra.mxu1 %v86_v1  ;;  %312 = vset.pattern.permute.xlu0 %v433_v23  ;;  %v92_v0 = vld [vmem:[#allocation7 + $0x18] sm:$0xff]  ;;  %v91_v1 = vld [vmem:[#allocation7 + $0x10] sm:$0xff] }
  0x17   :  { %268 = vmatpush.msra.mxu2 %v92_v0 }
  0x18   :  { %131 = vmatpush.msra.mxu1 %v84_v2  ;;  %v90_v2 = vld [vmem:[#allocation7 + $0x8] sm:$0xff] }
  0x19   :  { %269 = vmatpush.msra.mxu2 %v91_v1 }
  0x1a   :  { %132 = vmatpush.msra.mxu1 %v82_v3  ;;  %v87_v3 = vld [vmem:[#allocation6 + $0x30] sm:$0xff] }
  0x1b   :  { %299 = vmatmul.msk.f32.vlgmr.msra.gmra.mxu1 %vm93_vm0, %v471_v4  ;;  %109 = vmatpush.msra.mxu0 %v87_v3 }
  0x1c   :  { %270 = vmatpush.msra.mxu2 %v90_v2 }
  0x98   :  { %v134_v5 = vpop.f32.mrf.mxu1 }
  0x99   :  { %v138_v7 = vrot.slane %v134_v5, 1  ;;  %v139_v8 = vperm.slane %v134_v5, 0  ;;  %v89_v5 = vld [vmem:[#allocation7] sm:$0xff] }
  0x9a   :  { %271 = vmatpush.msra.mxu2 %v89_v5 }
  0x9b   :  { %v143_v9 = vmul.f32 %v139_v8, %v475_v6  ;;  %v140_v10 = vperm.slane %v138_v7, 0  ;;  %v85_v7 = vld [vmem:[#allocation6 + $0x20] sm:$0xff]  ;;  %v83_v8 = vld [vmem:[#allocation6 + $0x10] sm:$0xff] }
  0x9c   :  { %110 = vmatpush.msra.mxu0 %v85_v7 }
  0x9d   :  { %v145_v11 = vsel %vm93_vm0, %v143_v9, 0.0  ;;  %v144_v13 = vmul.f32 %v140_v10, %v479_v12  ;;  %v81_v9 = vld [vmem:[#allocation6] sm:$0xff] }
  0x9e   :  { %146 = vadd.xlane.f32.xlu0 %v145_v11  ;;  %111 = vmatpush.msra.mxu0 %v83_v8 }
  0x9f   :  { %v148_v14 = vsel %vm93_vm0, %v144_v13, 0.0 }
  0xa0   :  { %112 = vmatpush.msra.mxu0 %v81_v9 }
  0xa1   :  { %298 = vmatmul.msk.f32.vlgmr.msra.gmra.mxu0 %vm93_vm0, %v471_v4 }
  0xa6   :  { %149 = vadd.xlane.f32.xlu0 %v148_v14 }
 0x111   :  { %v147_v15 = vpop.xlane.xlu0 %146 }
 0x112   :  { %v155_v19 = vperm.slane %v147_v15, %v483_v17 }
 0x119   :  { %v150_v18 = vpop.xlane.xlu0 %149 }
 0x11a   :  { %v156_v20 = vperm.slane %v150_v18, %v483_v17 }
 0x11c   :  { %v158_v21 = vsel %vm157_vm1, %v156_v20, %v155_v19 }
 0x11d   :  { %v161_v22 = vsel %vm160_vm2, %v158_v21, -inf }
 0x11e   :  { %162 = vmax.xlane.f32.xlu1 %v161_v22 }
 0x191   :  { %v163_v24 = vpop.xlane.xlu1 %162 }
 0x192   :  { %v165_v25 = vperm.slane %v163_v24, 0  ;;  %v166_v26 = vperm.slane %v163_v24, 1 }
 0x194   :  { %v169_v27 = vsub.f32 %v147_v15, %v165_v25  ;;  %v170_v28 = vsub.f32 %v150_v18, %v166_v26 }
 0x196   :  { %v171_v29 = vmul.f32 1.442695, %v169_v27  ;;  %v173_v30 = vmul.f32 1.442695, %v170_v28 }
 0x198   :  { %313 = vpow2.f32 %v171_v29 }
 0x199   :  { %315 = vpow2.f32 %v173_v30  ;;  %v114_v30 = vpop.f32.mrf.mxu0 }
 0x19e   :  { %v314_v31 = vpop.eup %313 }
 0x19f   :  { %v316_v32 = vpop.eup %315  ;;  %178 = vperm.xlu1 %310, %v314_v31  }
 0x1a0   :  { %181 = vperm.xlu2 %311, %v316_v32  }
 0x1fa   :  { %v182_v33 = vpop.permute.xlu2 %181 }
 0x1fb   :  { %v184_v35 = vperm.slane %v182_v33, %v483_v17 }
 0x211   :  { %v179_v34 = vpop.permute.xlu1 %178 }
 0x212   :  { %v183_v36 = vperm.slane %v179_v34, %v483_v17 }
 0x214   :  { %v185_v37 = vsel %vm157_vm1, %v184_v35, %v183_v36 }
 0x215   :  { %v187_v38 = vsel %vm160_vm2, %v185_v37, 0.0 }
 0x216   :  { %188 = vadd.xlane.f32.xlu2 %v187_v38 }
 0x289   :  { %v189_v39 = vpop.xlane.xlu2 %188 }
 0x28a   :  { %v191_v40 = vperm.slane %v189_v39, 0  ;;  %v192_v41 = vperm.slane %v189_v39, 1 }
 0x28c   :  { %317 = vrcp.f32 %v191_v40  ;;  %v206_v48 = vand.u32 2147483648, %v191_v40  ;;  %v221_v49 = vand.u32 2147483648, %v192_v41  ;;  %v204_v51 = vand.u32 2147483647, %v191_v40 }
 0x28d   :  { %319 = vrcp.f32 %v192_v41  ;;  %v219_v53 = vand.u32 2147483647, %v192_v41  ;;  %vm200_vm5 = vweird.f32 %v191_v40  ;;  %vm215_vm6 = vweird.f32 %v192_v41 }
 0x28e   :  { %v207_v56 = vor.u32 1.1754944e-38, %v206_v48  ;;  %v222_v57 = vor.u32 1.1754944e-38, %v221_v49  ;;  %vm205_vm9 = vcmp.eq.f32.partialorder %v204_v51, 8.507059e+37 }
 0x28f   :  { %vm220_vm10 = vcmp.eq.f32.partialorder %v219_v53, 8.507059e+37 }
 0x292   :  { %v318_v42 = vpop.eup %317 }
 0x293   :  { %v320_v43 = vpop.eup %319  ;;  %v196_v44 = vmul.f32 %v318_v42, %v191_v40  ;;  %vm201_vm3 = vweird.f32 %v318_v42 }
 0x294   :  { %v211_v45 = vmul.f32 %v320_v43, %v192_v41  ;;  %vm216_vm4 = vweird.f32 %v320_v43  ;;  %vm202_vm7 = vmor %vm200_vm5, %vm201_vm3 }
 0x295   :  { %v197_v46 = vsub.f32 1.0, %v196_v44  ;;  %vm217_vm8 = vmor %vm215_vm6, %vm216_vm4 }
 0x296   :  { %v212_v47 = vsub.f32 1.0, %v211_v45 }
 0x297   :  { %v198_v50 = vmul.f32 %v318_v42, %v197_v46 }
 0x298   :  { %v213_v52 = vmul.f32 %v320_v43, %v212_v47 }
 0x299   :  { %v199_v54 = vadd.f32 %v318_v42, %v198_v50 }
 0x29a   :  { %v214_v55 = vadd.f32 %v320_v43, %v213_v52 }
 0x29b   :  { %v203_v58 = vsel %vm202_vm7, %v318_v42, %v199_v54 }
 0x29c   :  { %v218_v59 = vsel %vm217_vm8, %v320_v43, %v214_v55  ;;  %v208_v60 = vsel %vm205_vm9, %v207_v56, %v203_v58 }
 0x29d   :  { %v223_v61 = vsel %vm220_vm10, %v222_v57, %v218_v59  ;;  %v209_v62 = vmul.f32 %v314_v31, %v208_v60 }
 0x29e   :  { %v224_v63 = vmul.f32 %v316_v32, %v223_v61 }
 0x29f   :  { %227 = vperm.xlu0 %312, %v209_v62  }
 0x2a0   :  { %232 = vperm.xlu1 %310, %v224_v63  }
 0x311   :  { %v228_v10 = vpop.permute.xlu0 %227 }
 0x312   :  { %v233_v11 = vpop.permute.xlu1 %232  ;;  %v235_v13 = vmul.f32 %v228_v10, %v475_v6  ;;  %v277_v14 = vperm.slane %v228_v10, %v483_v17 }
 0x313   :  { %v236_v15 = vmul.f32 %v233_v11, %v479_v12  ;;  %v278_v16 = vperm.slane %v233_v11, %v483_v17 }
 0x314   :  { %v237_v18 = vsel %vm93_vm0, %v235_v13, 0.0 }
 0x315   :  { %v244_v19 = vsel %vm93_vm0, %v236_v15, 0.0  ;;  %v238_v20 = vrot.slane %v237_v18, 4  ;;  %v279_v21 = vsel %vm157_vm1, %v278_v16, %v277_v14 }
 0x316   :  { %v245_v22 = vrot.slane %v244_v19, 4  ;;  %v282_v33 = vsel %vm281_vm11, %v279_v21, 0.0 }
 0x317   :  { %v239_v23 = vadd.f32 %v238_v20, %v237_v18  ;;  %v284_v34 = vrot.slane %v282_v33, 6 }
 0x318   :  { %v246_v4 = vadd.f32 %v245_v22, %v244_v19 }
 0x319   :  { %v240_v24 = vrot.slane %v239_v23, 2 }
 0x31a   :  { %v247_v25 = vrot.slane %v246_v4, 2 }
 0x31b   :  { %v241_v26 = vadd.f32 %v240_v24, %v239_v23 }
 0x31c   :  { %v248_v6 = vadd.f32 %v247_v25, %v246_v4 }
 0x31d   :  { %v242_v27 = vrot.slane %v241_v26, 1 }
 0x31e   :  { %v249_v28 = vrot.slane %v248_v6, 1 }
 0x31f   :  { %v243_v29 = vadd.f32 %v242_v27, %v241_v26 }
 0x320   :  { %v250_v12 = vadd.f32 %v249_v28, %v248_v6 }
 0x322   :  { %v253_v17 = vsel %vm157_vm1, %v250_v12, %v243_v29 }
 0x323   :  { %300 = vmatmul.msk.f32.vlgmr.msra.gmra.mxu2 %vm93_vm0, %v253_v17 }
 0x3a6   :  { %v273_v31 = vpop.f32.mrf.mxu2 }
 0x3a7   :  { %v274_v32 = vadd.f32 %v273_v31, %v114_v30 }
 0x3a9   :  { %321 = vtanh.f32 %v274_v32 }
 0x3af   :  { %v322_v35 = vpop.eup %321 }
 0x3b0   :  { %v287_v36 = vsel %vm286_vm12, %v322_v35, %v284_v34 }
 0x3b1   :  { %v289_v37 = vsel %vm288_vm13, %v287_v36, 0.0 }
 0x3b2   :  { %290 = vst [vmem:[%s511_s4] sm:$0xff] %v289_v37 }
 0x3b3   :  { %295 = vsyncpa [#allocation3], 1 }
 0x3b4   :  { %296 = vsyncpa [#allocation5], 1 }
 0x3b5   :  { %297 = vsyncpa [#allocation8], 1 }

</bundles_post_ra>
